<compile_context>
chip_gen: v7x
topology: tpu7x:2x2x1
jax: 0.10.0
libtpu: 0.0.40
codegen_flags: <defaults>
</compile_context>

<pallas_src>
import jax
import jax.numpy as jnp
from jax.experimental import pallas as pl
from jax.experimental.pallas import tpu as pltpu

LEAKY_SLOPE = 0.01   # torch.nn.LeakyReLU default negative_slope
BN_EPS = 0.001       # BatchNorm1d(eps=0.001) in the module


def _round_up(x, m):
    return ((x + m - 1) // m) * m


def _leaky(h):
    return jnp.where(h > 0, h, LEAKY_SLOPE * h)


def adda_mlp_decoder_kernel(x_ref, w1_ref, b1_ref, w2_ref, b2_ref,
                            w3_ref, b3_ref, o_ref):
    # Layer 1: (BN-folded) Linear -> LeakyReLU.  Dropout == identity (eval).
    h = jnp.dot(x_ref[...], w1_ref[...],
                preferred_element_type=jnp.float32) + b1_ref[...]
    h = _leaky(h).astype(jnp.bfloat16)

    # Layer 2: (BN-folded) Linear -> LeakyReLU.
    h = jnp.dot(h, w2_ref[...],
                preferred_element_type=jnp.float32) + b2_ref[...]
    h = _leaky(h).astype(jnp.bfloat16)

    # Output layer: Linear -> Sigmoid (reciprocal on the EUP).
    out = jnp.dot(h, w3_ref[...],
                  preferred_element_type=jnp.float32) + b3_ref[...]
    o_ref[...] = pl.reciprocal(1.0 + jnp.exp(-out), approx=True).astype(o_ref.dtype)


def _fold_bn(w, b, gamma, beta, rmean, rvar):
    """Fold eval-mode BatchNorm1d into the preceding Linear (f32, exact)."""
    scale = gamma * jax.lax.rsqrt(rvar + BN_EPS)          # [out]
    w_f = w * scale[None, :]                               # [in, out]
    b_f = (b - rmean) * scale + beta                       # [out]
    return w_f, b_f


def adda_mlp_decoder(x, params, *, block_b=None):
    """Fused decoder forward.  x: [B, emb_dim] f32 -> [B, inp_dim] f32."""
    B, emb_dim = x.shape

    # Fold BN into the fused weights/biases (host side, f32).
    w1, b1 = _fold_bn(params["w1"], params["b1"], params["g1"], params["be1"],
                      params["rm1"], params["rv1"])
    w2, b2 = _fold_bn(params["w2"], params["b2"], params["g2"], params["be2"],
                      params["rm2"], params["rv2"])
    w3, b3 = params["w3"], params["b3"]
    h1, h2, inp_dim = w1.shape[1], w2.shape[1], w3.shape[1]

    # Lane-pad every feature dim to a multiple of 128 (dense vst / MXU tiles).
    emb_p = _round_up(emb_dim, 128)
    h1_p = _round_up(h1, 128)
    h2_p = _round_up(h2, 128)
    inp_p = _round_up(inp_dim, 128)

    # Batch tile: <=256 rows, multiple of 8; pad B so it divides evenly.
    if block_b is None:
        block_b = 256
    block_b = min(_round_up(block_b, 8), _round_up(B, 8))
    B_p = _round_up(B, block_b)
    grid = (B_p // block_b,)

    def pad2(a, rows, cols):
        return jnp.pad(a, ((0, rows - a.shape[0]), (0, cols - a.shape[1])))

    def padrow(v, cols):  # bias -> padded [1, cols] f32 row vector
        return jnp.pad(v.reshape(1, -1), ((0, 0), (0, cols - v.shape[0])))

    # bf16 weights / activations, f32 biases.
    x_p = pad2(x, B_p, emb_p).astype(jnp.bfloat16)
    w1_p = pad2(w1, emb_p, h1_p).astype(jnp.bfloat16)
    w2_p = pad2(w2, h1_p, h2_p).astype(jnp.bfloat16)
    w3_p = pad2(w3, h2_p, inp_p).astype(jnp.bfloat16)
    b1_p = padrow(b1, h1_p).astype(jnp.float32)
    b2_p = padrow(b2, h2_p).astype(jnp.float32)
    b3_p = padrow(b3, inp_p).astype(jnp.float32)

    # Constant-index parameter tiles: single-buffered (no pipelining needed).
    def const_spec(shape):
        return pl.BlockSpec(shape, lambda i: (0, 0), pipeline_mode=pl.Buffered(1))

    kernel = pl.pallas_call(
        adda_mlp_decoder_kernel,
        out_shape=jax.ShapeDtypeStruct((B_p, inp_p), jnp.float32),
        grid_spec=pltpu.PrefetchScalarGridSpec(
            num_scalar_prefetch=0,
            grid=grid,
            in_specs=[
                pl.BlockSpec((block_b, emb_p), lambda i: (i, 0)),   # x tile
                const_spec((emb_p, h1_p)), const_spec((1, h1_p)),   # w1', b1'
                const_spec((h1_p, h2_p)), const_spec((1, h2_p)),    # w2', b2'
                const_spec((h2_p, inp_p)), const_spec((1, inp_p)),  # w3,  b3
            ],
            out_specs=pl.BlockSpec((block_b, inp_p), lambda i: (i, 0)),
        ),
        compiler_params=pltpu.CompilerParams(
            dimension_semantics=("parallel",),
            vmem_limit_bytes=48 * 1024 * 1024,
        ),
    )

    out = kernel(x_p, w1_p, b1_p, w2_p, b2_p, w3_p, b3_p)
    return out[:B, :inp_dim]


def init_params(key, inp_dim, emb_dim, hidden_layer_sizes):
    """Deterministic synthetic parameters matching the module's shapes.

    Layer order after `reversed(hidden_layer_sizes)`:
      emb -> hidden_layer_sizes[-1] -> hidden_layer_sizes[0] -> inp_dim.
    Linear weights are stored as [in_features, out_features].
    """
    h_first = hidden_layer_sizes[-1]
    h_second = hidden_layer_sizes[0]
    ks = jax.random.split(key, 12)
    p = {}
    p["w1"] = 0.05 * jax.random.normal(ks[0], (emb_dim, h_first), jnp.float32)
    p["b1"] = 0.05 * jax.random.normal(ks[1], (h_first,), jnp.float32)
    p["g1"] = 1.0 + 0.1 * jax.random.normal(ks[2], (h_first,), jnp.float32)
    p["be1"] = 0.1 * jax.random.normal(ks[3], (h_first,), jnp.float32)
    p["rm1"] = 0.05 * jax.random.normal(ks[4], (h_first,), jnp.float32)
    p["rv1"] = 1.0 + 0.1 * jax.random.uniform(ks[5], (h_first,), jnp.float32)

    p["w2"] = 0.05 * jax.random.normal(ks[6], (h_first, h_second), jnp.float32)
    p["b2"] = 0.05 * jax.random.normal(ks[7], (h_second,), jnp.float32)
    p["g2"] = 1.0 + 0.1 * jax.random.normal(ks[8], (h_second,), jnp.float32)
    p["be2"] = 0.1 * jax.random.normal(ks[9], (h_second,), jnp.float32)
    p["rm2"] = 0.05 * jax.random.normal(ks[10], (h_second,), jnp.float32)
    p["rv2"] = 1.0 + 0.1 * jax.random.uniform(ks[11], (h_second,), jnp.float32)

    k_w3, k_b3 = jax.random.split(jax.random.fold_in(key, 99))
    p["w3"] = 0.05 * jax.random.normal(k_w3, (h_second, inp_dim), jnp.float32)
    p["b3"] = 0.05 * jax.random.normal(k_b3, (inp_dim,), jnp.float32)
    return p


def reference_forward(x, p):
    """Pure-JAX f32 reference mirroring the PyTorch forward (eval mode)."""
    def bn_leaky(h, g, be, rm, rv):
        y = (h - rm) / jnp.sqrt(rv + BN_EPS) * g + be
        return jnp.where(y > 0, y, LEAKY_SLOPE * y)

    h = x @ p["w1"] + p["b1"]
    h = bn_leaky(h, p["g1"], p["be1"], p["rm1"], p["rv1"])
    h = h @ p["w2"] + p["b2"]
    h = bn_leaky(h, p["g2"], p["be2"], p["rm2"], p["rv2"])
    h = h @ p["w3"] + p["b3"]
    return jax.nn.sigmoid(h)


if __name__ == "__main__":
    # Small shapes consistent with the module: batch=8, emb_dim=32,
    # inp_dim=64, hidden_layer_sizes scaled down to (256, 128).
    B, emb_dim, inp_dim = 8, 32, 64
    hidden_layer_sizes = (256, 128)

    key = jax.random.PRNGKey(0)
    k_x, k_p = jax.random.split(key)
    x = jax.random.normal(k_x, (B, emb_dim), jnp.float32)
    params = init_params(k_p, inp_dim, emb_dim, hidden_layer_sizes)

    out = adda_mlp_decoder(x, params)
    out = jax.block_until_ready(out)

    ref = reference_forward(x, params)
    assert out.shape == (B, inp_dim)
    # bf16 matmuls + approx reciprocal: allow ~1e-2 absolute error on [0,1] outputs.
    assert jnp.allclose(out, ref, atol=1e-2, rtol=1e-2), "mismatch vs reference"

    # TODO(synk): Dropout has no effect in eval mode; no stochastic path implemented.
    print("KERNEL_OK")
</pallas_src>

<mosaic_0001>
module attributes {stable_mosaic.version = 11 : i64} {
  func.func @adda_mlp_decoder_kernel(%arg0: i32, %arg1: memref<8x128xbf16, #tpu.memory_space<vmem>>, %arg2: memref<128x128xbf16, #tpu.memory_space<vmem>>, %arg3: memref<1x128xf32, #tpu.memory_space<vmem>>, %arg4: memref<128x256xbf16, #tpu.memory_space<vmem>>, %arg5: memref<1x256xf32, #tpu.memory_space<vmem>>, %arg6: memref<256x128xbf16, #tpu.memory_space<vmem>>, %arg7: memref<1x128xf32, #tpu.memory_space<vmem>>, %arg8: memref<8x128xf32, #tpu.memory_space<vmem>>) attributes {dimension_semantics = [#tpu.dimension_semantics<parallel>], iteration_bounds = array<i64: 1>, scalar_prefetch = 0 : i64, scratch_operands = 0 : i64, tpu.core_type = #tpu.core_type<tc>, window_params = [{transform_indices = @transform_0, window_bounds = array<i64: 8, 128>}, {pipeline_mode = #tpu.pipeline_mode<synchronous>, transform_indices = @transform_1, window_bounds = array<i64: 128, 128>}, {pipeline_mode = #tpu.pipeline_mode<synchronous>, transform_indices = @transform_2, window_bounds = array<i64: 1, 128>}, {pipeline_mode = #tpu.pipeline_mode<synchronous>, transform_indices = @transform_3, window_bounds = array<i64: 128, 256>}, {pipeline_mode = #tpu.pipeline_mode<synchronous>, transform_indices = @transform_4, window_bounds = array<i64: 1, 256>}, {pipeline_mode = #tpu.pipeline_mode<synchronous>, transform_indices = @transform_5, window_bounds = array<i64: 256, 128>}, {pipeline_mode = #tpu.pipeline_mode<synchronous>, transform_indices = @transform_6, window_bounds = array<i64: 1, 128>}, {transform_indices = @transform_7, window_bounds = array<i64: 8, 128>}]} {
    %c0 = arith.constant 0 : index
    %c0_0 = arith.constant 0 : index
    %0 = vector.load %arg1[%c0, %c0_0] : memref<8x128xbf16, #tpu.memory_space<vmem>>, vector<8x128xbf16>
    %c0_1 = arith.constant 0 : index
    %c0_2 = arith.constant 0 : index
    %1 = vector.load %arg2[%c0_1, %c0_2] : memref<128x128xbf16, #tpu.memory_space<vmem>>, vector<128x128xbf16>
    %cst = arith.constant dense<0.000000e+00> : vector<8x128xf32>
    %2 = tpu.matmul %0, %1, %cst {dimension_numbers = #tpu.dot_dimension_numbers<[1], [0], [0], [1], [0, 0, 1, 1], [], []>} : vector<8x128xbf16>, vector<128x128xbf16>, vector<8x128xf32> -> vector<8x128xf32>
    %c0_3 = arith.constant 0 : index
    %c0_4 = arith.constant 0 : index
    %3 = vector.load %arg3[%c0_3, %c0_4] : memref<1x128xf32, #tpu.memory_space<vmem>>, vector<1x128xf32>
    %4 = vector.broadcast %3 : vector<1x128xf32> to vector<8x128xf32>
    %5 = arith.addf %2, %4 : vector<8x128xf32>
    %cst_5 = arith.constant 0.000000e+00 : f32
    %6 = vector.broadcast %cst_5 : f32 to vector<8x128xf32>
    %7 = arith.cmpf ogt, %5, %6 : vector<8x128xf32>
    %cst_6 = arith.constant 0.00999999977 : f32
    %8 = vector.broadcast %cst_6 : f32 to vector<8x128xf32>
    %9 = arith.mulf %8, %5 : vector<8x128xf32>
    %10 = arith.select %7, %5, %9 : vector<8x128xi1>, vector<8x128xf32>
    %11 = arith.truncf %10 : vector<8x128xf32> to vector<8x128xbf16>
    %c0_7 = arith.constant 0 : index
    %c0_8 = arith.constant 0 : index
    %12 = vector.load %arg4[%c0_7, %c0_8] : memref<128x256xbf16, #tpu.memory_space<vmem>>, vector<128x256xbf16>
    %cst_9 = arith.constant dense<0.000000e+00> : vector<8x256xf32>
    %13 = tpu.matmul %11, %12, %cst_9 {dimension_numbers = #tpu.dot_dimension_numbers<[1], [0], [0], [1], [0, 0, 1, 1], [], []>} : vector<8x128xbf16>, vector<128x256xbf16>, vector<8x256xf32> -> vector<8x256xf32>
    %c0_10 = arith.constant 0 : index
    %c0_11 = arith.constant 0 : index
    %14 = vector.load %arg5[%c0_10, %c0_11] : memref<1x256xf32, #tpu.memory_space<vmem>>, vector<1x256xf32>
    %15 = vector.broadcast %14 : vector<1x256xf32> to vector<8x256xf32>
    %16 = arith.addf %13, %15 : vector<8x256xf32>
    %cst_12 = arith.constant 0.000000e+00 : f32
    %17 = vector.broadcast %cst_12 : f32 to vector<8x256xf32>
    %18 = arith.cmpf ogt, %16, %17 : vector<8x256xf32>
    %cst_13 = arith.constant 0.00999999977 : f32
    %19 = vector.broadcast %cst_13 : f32 to vector<8x256xf32>
    %20 = arith.mulf %19, %16 : vector<8x256xf32>
    %21 = arith.select %18, %16, %20 : vector<8x256xi1>, vector<8x256xf32>
    %22 = arith.truncf %21 : vector<8x256xf32> to vector<8x256xbf16>
    %c0_14 = arith.constant 0 : index
    %c0_15 = arith.constant 0 : index
    %23 = vector.load %arg6[%c0_14, %c0_15] : memref<256x128xbf16, #tpu.memory_space<vmem>>, vector<256x128xbf16>
    %cst_16 = arith.constant dense<0.000000e+00> : vector<8x128xf32>
    %24 = tpu.matmul %22, %23, %cst_16 {dimension_numbers = #tpu.dot_dimension_numbers<[1], [0], [0], [1], [0, 0, 1, 1], [], []>} : vector<8x256xbf16>, vector<256x128xbf16>, vector<8x128xf32> -> vector<8x128xf32>
    %c0_17 = arith.constant 0 : index
    %c0_18 = arith.constant 0 : index
    %25 = vector.load %arg7[%c0_17, %c0_18] : memref<1x128xf32, #tpu.memory_space<vmem>>, vector<1x128xf32>
    %26 = vector.broadcast %25 : vector<1x128xf32> to vector<8x128xf32>
    %27 = arith.addf %24, %26 : vector<8x128xf32>
    %cst_19 = arith.constant 0.000000e+00 : f32
    %28 = vector.broadcast %cst_19 : f32 to vector<8x128xf32>
    %29 = arith.subf %28, %27 : vector<8x128xf32>
    %30 = math.exp %29 : vector<8x128xf32>
    %cst_20 = arith.constant 1.000000e+00 : f32
    %31 = vector.broadcast %cst_20 : f32 to vector<8x128xf32>
    %32 = arith.addf %31, %30 : vector<8x128xf32>
    %33 = tpu.reciprocal %32 {approx = true} : vector<8x128xf32> -> vector<8x128xf32>
    %c0_21 = arith.constant 0 : index
    %c0_22 = arith.constant 0 : index
    %34 = vector.load %arg8[%c0_21, %c0_22] : memref<8x128xf32, #tpu.memory_space<vmem>>, vector<8x128xf32>
    tpu.vector_store %arg8[%c0_21, %c0_22], %33 {strides = array<i32>} : memref<8x128xf32, #tpu.memory_space<vmem>>, vector<8x128xf32>,
    return
  }
  func.func @transform_0(%arg0: i32) -> (i32, i32) {
    %c0_i32 = arith.constant 0 : i32
    %c0_i32_0 = arith.constant 0 : i32
    return %arg0, %c0_i32 : i32, i32
  }
  func.func @transform_1(%arg0: i32) -> (i32, i32) {
    %c0_i32 = arith.constant 0 : i32
    %c0_i32_0 = arith.constant 0 : i32
    %c0_i32_1 = arith.constant 0 : i32
    return %c0_i32, %c0_i32_0 : i32, i32
  }
  func.func @transform_2(%arg0: i32) -> (i32, i32) {
    %c0_i32 = arith.constant 0 : i32
    %c0_i32_0 = arith.constant 0 : i32
    %c0_i32_1 = arith.constant 0 : i32
    return %c0_i32, %c0_i32_0 : i32, i32
  }
  func.func @transform_3(%arg0: i32) -> (i32, i32) {
    %c0_i32 = arith.constant 0 : i32
    %c0_i32_0 = arith.constant 0 : i32
    %c0_i32_1 = arith.constant 0 : i32
    return %c0_i32, %c0_i32_0 : i32, i32
  }
  func.func @transform_4(%arg0: i32) -> (i32, i32) {
    %c0_i32 = arith.constant 0 : i32
    %c0_i32_0 = arith.constant 0 : i32
    %c0_i32_1 = arith.constant 0 : i32
    return %c0_i32, %c0_i32_0 : i32, i32
  }
  func.func @transform_5(%arg0: i32) -> (i32, i32) {
    %c0_i32 = arith.constant 0 : i32
    %c0_i32_0 = arith.constant 0 : i32
    %c0_i32_1 = arith.constant 0 : i32
    return %c0_i32, %c0_i32_0 : i32, i32
  }
  func.func @transform_6(%arg0: i32) -> (i32, i32) {
    %c0_i32 = arith.constant 0 : i32
    %c0_i32_0 = arith.constant 0 : i32
    %c0_i32_1 = arith.constant 0 : i32
    return %c0_i32, %c0_i32_0 : i32, i32
  }
  func.func @transform_7(%arg0: i32) -> (i32, i32) {
    %c0_i32 = arith.constant 0 : i32
    %c0_i32_0 = arith.constant 0 : i32
    return %arg0, %c0_i32 : i32, i32
  }
}

</mosaic_0001>

<bundles_post_ra>
// kernel: tpu_custom_call.1
= control target key start
LH: loop header
LB: loop body
LE: loop exit
PB: predicated region body
PF: predicated region fallthrough
CT: control target
= control target key end

     0   :  { %12 = vsyncpa [#allocation3], 0  ;;  %s954_s0 = inlined_call_operand.hbm [shape: bf16[8,128], index: 0, kind: input, shape index: {}]   ;;  %s955_s1 = inlined_call_operand.hbm [shape: bf16[128,128], index: 1, kind: input, shape index: {}]   ;;  %s956_s2 = inlined_call_operand.vmem [shape: f32[1,128], index: 2, kind: input, shape index: {}]   ;;  %s957_s3 = inlined_call_operand.hbm [shape: bf16[128,256], index: 3, kind: input, shape index: {}]   ;;  %s958_s4 = inlined_call_operand.vmem [shape: f32[1,256], index: 4, kind: input, shape index: {}]   ;;  %s959_s5 = inlined_call_operand.hbm [shape: bf16[256,128], index: 5, kind: input, shape index: {}]   ;;  %s960_s6 = inlined_call_operand.vmem [shape: f32[1,128], index: 6, kind: input, shape index: {}]   ;;  %s961_s7 = inlined_call_operand.hbm [shape: f32[8,128], index: 7, kind: output, shape index: {}]  }
   0x1   :  { %13 = vsyncpa [#allocation6], 0 }
   0x2   :  { %14 = vsyncpa [#allocation9], 0 }
   0x3   :  { %15 = vsyncpa [#allocation4], 0  ;;  %s827_s24 = smov [#allocation5]   ;;  %s709_s28 = scalar_lea.hbm %s955_s1, 1024 }
   0x4   :  { %s31_s25 = sshll.u32 %s827_s24, 4  ;;  %p710_p0 = scmp.ne.s32.totalorder %s955_s1, %s709_s28  ;;  %s32_s25 = int_to_ptr.vmem [resolvable:$true] %s31_s25 }
   0x5   :  { %p713_p1 = scmp.lt.u32.totalorder %s709_s28, %s955_s1 }
   0x7   :  { %p715_p2 = pnand %p713_p1, %p710_p0 }
   0x9   :  { %718 = shalt.err (!%p715_p2)
}
   0xa   :  { %s719_s10 = scalar_lea.vmem %s32_s25, 1024  ;;  %p724_p4 = scmp.lt.s32.totalorder %s32_s25, %s32_s25 }
   0xb   :  { %p720_p3 = scmp.ne.s32.totalorder %s32_s25, %s719_s10  ;;  %p725_p5 = scmp.lt.s32.totalorder %s719_s10, %s719_s10 }
   0xd   :  { %p726_p6 = por %p725_p5, %p724_p4 }
   0xf   :  { %p727_p7 = pnand %p726_p6, %p720_p3 }
  0x11   :  { %730 = shalt.err (!%p727_p7)
}
  0x12   :  { %s828_s11 = smov 64   ;;  %s829_s12 = smov 4  }
  0x13   :  { %37 = dma.hbm_to_vmem [thread:$0]  %s955_s1, 1024, %s32_s25, [#allocation6], %s828_s11, %s828_s11, %s829_s12  }
  0x14   :  { %s830_s15 = smov [#allocation2]   ;;  %s831_s17 = smov [#allocation7]  }
  0x15   :  { %s22_s16 = sshll.u32 %s830_s15, 4  ;;  %s45_s18 = sshll.u32 %s831_s17, 4  ;;  %s23_s16 = int_to_ptr.vmem [resolvable:$true] %s22_s16  ;;  %s46_s18 = int_to_ptr.vmem [resolvable:$true] %s45_s18 }
  0x16   :  { %s731_s21 = scalar_lea.hbm %s954_s0, 64 }
  0x17   :  { %p732_p8 = scmp.ne.s32.totalorder %s954_s0, %s731_s21  ;;  %p735_p9 = scmp.lt.u32.totalorder %s731_s21, %s954_s0 }
  0x19   :  { %p737_p10 = pnand %p735_p9, %p732_p8 }
  0x1b   :  { %740 = shalt.err (!%p737_p10)
}
  0x1c   :  { %s741_s1 = scalar_lea.vmem %s23_s16, 64  ;;  %p746_p12 = scmp.lt.s32.totalorder %s23_s16, %s23_s16 }
  0x1d   :  { %p742_p11 = scmp.ne.s32.totalorder %s23_s16, %s741_s1  ;;  %p747_p13 = scmp.lt.s32.totalorder %s741_s1, %s741_s1 }
  0x1f   :  { %p748_p0 = por %p747_p13, %p746_p12 }
  0x21   :  { %p749_p1 = pnand %p748_p0, %p742_p11 }
  0x23   :  { %752 = shalt.err (!%p749_p1)
}
  0x24   :  { %25 = dma.hbm_to_vmem [thread:$0]  %s954_s0, 64, %s23_s16, [#allocation3]  }
  0x25   :  { %s753_s30 = scalar_lea.hbm %s957_s3, 2048 }
  0x26   :  { %p754_p2 = scmp.ne.s32.totalorder %s957_s3, %s753_s30  ;;  %p757_p3 = scmp.lt.u32.totalorder %s753_s30, %s957_s3 }
  0x28   :  { %p759_p4 = pnand %p757_p3, %p754_p2 }
  0x2a   :  { %762 = shalt.err (!%p759_p4)
}
  0x2b   :  { %s763_s14 = scalar_lea.vmem %s46_s18, 2048  ;;  %p768_p6 = scmp.lt.s32.totalorder %s46_s18, %s46_s18 }
  0x2c   :  { %p764_p5 = scmp.ne.s32.totalorder %s46_s18, %s763_s14  ;;  %p769_p7 = scmp.lt.s32.totalorder %s763_s14, %s763_s14 }
  0x2e   :  { %p770_p8 = por %p769_p7, %p768_p6 }
  0x30   :  { %p771_p9 = pnand %p770_p8, %p764_p5 }
  0x32   :  { %774 = shalt.err (!%p771_p9)
}
  0x33   :  { %s832_s0 = smov 128   ;;  %s833_s15 = smov 8  }
  0x34   :  { %51 = dma.hbm_to_vmem [thread:$0]  %s957_s3, 2048, %s46_s18, [#allocation6], %s832_s0, %s832_s0, %s833_s15  }
  0x35   :  { %s834_s19 = smov [#allocation8]   ;;  %s775_s23 = scalar_lea.hbm %s959_s5, 2048 }
  0x36   :  { %s59_s20 = sshll.u32 %s834_s19, 4  ;;  %p776_p10 = scmp.ne.s32.totalorder %s959_s5, %s775_s23  ;;  %s60_s20 = int_to_ptr.vmem [resolvable:$true] %s59_s20 }
  0x37   :  { %p779_p11 = scmp.lt.u32.totalorder %s775_s23, %s959_s5 }
  0x39   :  { %p781_p12 = pnand %p779_p11, %p776_p10 }
  0x3b   :  { %784 = shalt.err (!%p781_p12)
}
  0x3c   :  { %s785_s27 = scalar_lea.vmem %s60_s20, 2048  ;;  %p790_p0 = scmp.lt.s32.totalorder %s60_s20, %s60_s20 }
  0x3d   :  { %p786_p13 = scmp.ne.s32.totalorder %s60_s20, %s785_s27  ;;  %p791_p1 = scmp.lt.s32.totalorder %s785_s27, %s785_s27 }
  0x3f   :  { %p792_p2 = por %p791_p1, %p790_p0 }
  0x41   :  { %p793_p3 = pnand %p792_p2, %p786_p13 }
  0x43   :  { %796 = shalt.err (!%p793_p3)
}
  0x44   :  { %65 = dma.hbm_to_vmem [thread:$0]  %s959_s5, 2048, %s60_s20, [#allocation9], %s828_s11, %s828_s11, %s829_s12  }
  0x45   :  { %819 = dma.done.wait [#allocation3], 64  }
  0x46   :  { %820 = vsyncadd [#allocation3], 4294967232 }
  0x47   :  { %821 = dma.done.wait [#allocation6], 3072  }
  0x48   :  { %822 = vsyncadd [#allocation6], 4294964224 }
  0x49   :  { %823 = dma.done.wait [#allocation9], 2048  }
  0x4a   :  { %824 = vsyncadd [#allocation9], 4294965248  ;;  %v835_v0 = vmov 0.0   ;;  %vm836_vm0 = vmmov 0   ;;  %v657_v1 = vld [vmem:[#allocation5] sm:$0xff]   ;;  %v658_v2 = vld [vmem:[#allocation5 + $0x8] sm:$0xff]   ;;  %v215_v52 = vlaneseq }
  0x4b   :  { %625 = vmatprep.subr.bf16.mxu0 %v835_v0  ;;  %641 = vmatprep.mubr.msk.bf16.mxu0 %vm836_vm0, %v835_v0  ;;  %v659_v3 = vld [vmem:[#allocation5 + $0x10] sm:$0xff]   ;;  %v665_v4 = vld [vmem:[#allocation7 + $0x4] ss:$8 sps:$4 sm:$0xff]   ;;  %v667_v5 = vld [vmem:[#allocation7] ss:$8 sps:$4 sm:$0xff]   ;;  %v837_v26 = vmov 0  }
  0x4c   :  { %626 = vmatpush3.bf16.msra.mxu0 %v657_v1  ;;  %v660_v6 = vld [vmem:[#allocation5 + $0x18] sm:$0xff]   ;;  %305 = vmatprep.subr.bf16.mxu1 %v665_v4  ;;  %v671_v9 = vld [vmem:[#allocation7 + $0x24] ss:$8 sps:$4 sm:$0xff]   ;;  %v673_v12 = vld [vmem:[#allocation7 + $0x20] ss:$8 sps:$4 sm:$0xff]   ;;  %v216_v53 = vshrl.u32 %v215_v52, 7 }
  0x4d   :  { %627 = vmatprep.subr.bf16.mxu0 %v835_v0  ;;  %v668_v7 = vld [vmem:[#allocation7 + $0x14] ss:$8 sps:$4 sm:$0xff]   ;;  %306 = vmatpush1.bf16.msra.mxu1 %v667_v5  ;;  %v670_v8 = vld [vmem:[#allocation7 + $0x10] ss:$8 sps:$4 sm:$0xff]   ;;  %v661_v10 = vld [vmem:[#allocation5 + $0x20] sm:$0xff]   ;;  %s838_s29 = smov [#allocation10]  }
  0x4e   :  { %307 = vmatprep.subr.bf16.mxu1 %v668_v7  ;;  %v662_v11 = vld [vmem:[#allocation5 + $0x28] sm:$0xff]   ;;  %v674_v13 = vld [vmem:[#allocation7 + $0x34] ss:$8 sps:$4 sm:$0xff]   ;;  %v676_v14 = vld [vmem:[#allocation7 + $0x30] ss:$8 sps:$4 sm:$0xff]   ;;  %337 = vmatprep.mubr.bf16.mxu1 %v837_v26  ;;  %v217_v54 = vsub.s32 0, %v216_v53 }
  0x4f   :  { %v677_v15 = vld [vmem:[#allocation7 + $0x44] ss:$8 sps:$4 sm:$0xff]   ;;  %v663_v16 = vld [vmem:[#allocation5 + $0x30] sm:$0xff]   ;;  %v679_v17 = vld [vmem:[#allocation7 + $0x40] ss:$8 sps:$4 sm:$0xff]   ;;  %v221_v56 = vsub.s32 1, %v216_v53 }
  0x50   :  { %628 = vmatpush3.bf16.msra.mxu0 %v658_v2  ;;  %v680_v18 = vld [vmem:[#allocation7 + $0x54] ss:$8 sps:$4 sm:$0xff]   ;;  %v682_v20 = vld [vmem:[#allocation7 + $0x50] ss:$8 sps:$4 sm:$0xff]   ;;  %v683_v22 = vld [vmem:[#allocation7 + $0x64] ss:$8 sps:$4 sm:$0xff]  }
  0x51   :  { %629 = vmatprep.subr.bf16.mxu0 %v835_v0  ;;  %308 = vmatpush1.bf16.msra.mxu1 %v670_v8  ;;  %v664_v19 = vld [vmem:[#allocation5 + $0x38] sm:$0xff]   ;;  %v685_v23 = vld [vmem:[#allocation7 + $0x60] ss:$8 sps:$4 sm:$0xff]   ;;  %v693_v31 = vld [vmem:[#allocation8 + $0x50] sm:$0xff]   ;;  %s541_s30 = sshll.u32 %s838_s29, 4  ;;  %s542_s30 = int_to_ptr.vmem [resolvable:$true] %s541_s30 }
  0x52   :  { %309 = vmatprep.subr.bf16.mxu1 %v671_v9  ;;  %v81_v21 = vld [vmem:[#allocation2] sm:$0xf]  ;;  %v688_v25 = vld [vmem:[#allocation7 + $0x70] ss:$8 sps:$4 sm:$0xff]   ;;  %v689_v27 = vld [vmem:[#allocation8 + $0x40] sm:$0xff]   ;;  %s797_s8 = scalar_lea.vmem %s542_s30, 128  ;;  %p802_p5 = scmp.lt.s32.totalorder %s542_s30, %s542_s30 }
  0x53   :  { %v686_v24 = vld [vmem:[#allocation7 + $0x74] ss:$8 sps:$4 sm:$0xff]   ;;  %v690_v28 = vld [vmem:[#allocation8] sm:$0xff]   ;;  %v691_v29 = vld [vmem:[#allocation8 + $0x48] sm:$0xff]   ;;  %p798_p4 = scmp.ne.s32.totalorder %s542_s30, %s797_s8  ;;  %p803_p6 = scmp.lt.s32.totalorder %s797_s8, %s797_s8 }
  0x54   :  { %630 = vmatpush3.bf16.msra.mxu0 %v659_v3  ;;  %v692_v30 = vld [vmem:[#allocation8 + $0x8] sm:$0xff]   ;;  %v694_v32 = vld [vmem:[#allocation8 + $0x10] sm:$0xff]   ;;  %v695_v33 = vld [vmem:[#allocation8 + $0x58] sm:$0xff]  }
  0x55   :  { %631 = vmatprep.subr.bf16.mxu0 %v835_v0  ;;  %310 = vmatpush1.bf16.msra.mxu1 %v673_v12  ;;  %v696_v34 = vld [vmem:[#allocation8 + $0x18] sm:$0xff]   ;;  %v697_v35 = vld [vmem:[#allocation8 + $0x60] sm:$0xff]   ;;  %v699_v37 = vld [vmem:[#allocation8 + $0x68] sm:$0xff]   ;;  %p804_p7 = por %p803_p6, %p802_p5 }
  0x56   :  { %311 = vmatprep.subr.bf16.mxu1 %v674_v13  ;;  %v698_v36 = vld [vmem:[#allocation8 + $0x20] sm:$0xff]   ;;  %v700_v38 = vld [vmem:[#allocation8 + $0x28] sm:$0xff]   ;;  %v552_v39 = vld [vmem:[%s956_s2] ss:$0 sm:$0xff] }
  0x57   :  { %v701_v48 = vld [vmem:[#allocation8 + $0x70] sm:$0xff]   ;;  %v703_v50 = vld [vmem:[#allocation8 + $0x78] sm:$0xff]   ;;  %p805_p8 = pnand %p804_p7, %p798_p4 }
  0x58   :  { %632 = vmatpush3.bf16.msra.mxu0 %v660_v6  ;;  %v702_v49 = vld [vmem:[#allocation8 + $0x30] sm:$0xff]   ;;  %v704_v51 = vld [vmem:[#allocation8 + $0x38] sm:$0xff]  }
  0x59   :  { %633 = vmatprep.subr.bf16.mxu0 %v835_v0  ;;  %312 = vmatpush1.bf16.msra.mxu1 %v676_v14  ;;  %v213_v55 = vld [vmem:[%s958_s4] sm:$0x3] }
  0x5a   :  { %313 = vmatprep.subr.bf16.mxu1 %v677_v15  ;;  %v218_v57 = vrot.slane %v213_v55, %v217_v54  ;;  %v222_v58 = vrot.slane %v213_v55, %v221_v56  ;;  %v577_v8 = vld [vmem:[%s960_s6] ss:$0 sm:$0xff] }
  0x5c   :  { %634 = vmatpush3.bf16.msra.mxu0 %v661_v10 }
  0x5d   :  { %635 = vmatprep.subr.bf16.mxu0 %v835_v0  ;;  %314 = vmatpush1.bf16.msra.mxu1 %v679_v17 }
  0x5e   :  { %315 = vmatprep.subr.bf16.mxu1 %v680_v18 }
  0x60   :  { %636 = vmatpush3.bf16.msra.mxu0 %v662_v11 }
  0x61   :  { %637 = vmatprep.subr.bf16.mxu0 %v835_v0  ;;  %316 = vmatpush1.bf16.msra.mxu1 %v682_v20 }
  0x62   :  { %317 = vmatprep.subr.bf16.mxu1 %v683_v22 }
  0x64   :  { %638 = vmatpush3.bf16.msra.mxu0 %v663_v16 }
  0x65   :  { %639 = vmatprep.subr.bf16.mxu0 %v835_v0  ;;  %318 = vmatpush1.bf16.msra.mxu1 %v685_v23 }
  0x66   :  { %319 = vmatprep.subr.bf16.mxu1 %v686_v24 }
  0x68   :  { %640 = vmatpush3.bf16.msra.mxu0 %v664_v19 }
  0x69   :  { %320 = vmatpush1.bf16.msra.mxu1 %v688_v25  ;;  %603 = vmatprep.subr.bf16.mxu0 %v689_v27 }
  0x6b   :  { %642 = vmatmul.mubr.bf16.vlgmr.msra.gmra.mrb[0].mxu0 %v81_v21 }
  0x6c   :  { %604 = vmatpush3.bf16.msra.mxu0 %v690_v28 }
  0x6d   :  { %605 = vmatprep.subr.bf16.mxu0 %v691_v29 }
  0x70   :  { %606 = vmatpush3.bf16.msra.mxu0 %v692_v30 }
  0x71   :  { %607 = vmatprep.subr.bf16.mxu0 %v693_v31 }
  0x74   :  { %608 = vmatpush3.bf16.msra.mxu0 %v694_v32 }
  0x75   :  { %609 = vmatprep.subr.bf16.mxu0 %v695_v33 }
  0x78   :  { %610 = vmatpush3.bf16.msra.mxu0 %v696_v34 }
  0x79   :  { %611 = vmatprep.subr.bf16.mxu0 %v697_v35 }
  0x7c   :  { %612 = vmatpush3.bf16.msra.mxu0 %v698_v36 }
  0x7d   :  { %613 = vmatprep.subr.bf16.mxu0 %v699_v37 }
  0x80   :  { %614 = vmatpush3.bf16.msra.mxu0 %v700_v38 }
  0x81   :  { %615 = vmatprep.subr.bf16.mxu0 %v701_v48 }
  0x84   :  { %616 = vmatpush3.bf16.msra.mxu0 %v702_v49 }
  0x85   :  { %617 = vmatprep.subr.bf16.mxu0 %v703_v50 }
  0x88   :  { %618 = vmatpush3.bf16.msra.mxu0 %v704_v51 }
 0x13e   :  { %v187_v40 = vpop.f32.mrb[0].mxu0 }
 0x13f   :  { %v188_v41 = vadd.f32 %v552_v39, %v187_v40  ;;  %v643_v42 = vpop.f32.mrb[1].mxu0 }
 0x140   :  { %v190_v43 = vpop.f32.mrb[2].mxu0 }
 0x141   :  { %vm193_vm1 = vcmp.gt.f32.partialorder %v188_v41, 0.0  ;;  %v194_v44 = vmul.f32 0.01, %v188_v41  ;;  %v644_v45 = vpop.f32.mrb[3].mxu0 }
 0x143   :  { %v195_v46 = vsel %vm193_vm1, %v188_v41, %v194_v44 }
 0x144   :  { %v196_v47 = vpack.c.bf16 %v195_v46, %v195_v46 }
 0x146   :  { %338 = vmatmul.mubr.bf16.vlgmr.msra.gmra.mrb[0].mxu1 %v196_v47 }
 0x219   :  { %v339_v59 = vpop.f32.mrb[0].mxu1 }
 0x21a   :  { %v340_v60 = vadd.f32 %v339_v59, %v218_v57  ;;  %v341_v61 = vpop.f32.mrb[1].mxu1 }
 0x21b   :  { %v342_v62 = vadd.f32 %v341_v61, %v222_v58  ;;  %v343_v63 = vpop.f32.mrb[2].mxu1 }
 0x21c   :  { %vm346_vm2 = vcmp.gt.f32.partialorder %v340_v60, 0.0  ;;  %v348_v0 = vmul.f32 0.01, %v340_v60  ;;  %v344_v1 = vpop.f32.mrb[3].mxu1 }
 0x21d   :  { %vm347_vm3 = vcmp.gt.f32.partialorder %v342_v62, 0.0  ;;  %v349_v2 = vmul.f32 0.01, %v342_v62 }
 0x21e   :  { %v350_v3 = vsel %vm346_vm2, %v340_v60, %v348_v0 }
 0x21f   :  { %v351_v4 = vsel %vm347_vm3, %v342_v62, %v349_v2  ;;  %v352_v6 = vpack.c.bf16 %v350_v3, %v350_v3 }
 0x220   :  { %v353_v5 = vpack.c.bf16 %v351_v4, %v351_v4 }
 0x222   :  { %521 = vmatprep.mubr.bf16.mxu0 %v353_v5 }
 0x223   :  { %522 = vmatmul.mubr.bf16.vlgmr.msra.gmra.mrb[4].mxu0 %v352_v6 }
 0x2f6   :  { %v619_v7 = vpop.f32.mrb[4].mxu0 }
 0x2f7   :  { %v620_v9 = vpop.f32.mrb[5].mxu0 }
 0x2f8   :  { %v621_v10 = vadd.f32 %v620_v9, %v619_v7  ;;  %v622_v11 = vpop.f32.mrb[6].mxu0 }
 0x2f9   :  { %v623_v12 = vpop.f32.mrb[7].mxu0 }
 0x2fa   :  { %v524_v13 = vadd.f32 %v621_v10, %v577_v8 }
 0x2fc   :  { %v529_v14 = vsub.f32 0.0, %v524_v13 }
 0x2fe   :  { %v530_v15 = vmul.f32 1.442695, %v529_v14 }
 0x300   :  { %705 = vpow2.f32 %v530_v15 }
 0x30a   :  { %v706_v16 = vpop.eup %705 }
 0x30b   :  { %v532_v17 = vadd.f32 1.0, %v706_v16 }
 0x30d   :  { %707 = vrcp.f32 %v532_v17 }
 0x317   :  { %v708_v18 = vpop.eup %707 }
 0x318   :  { %534 = vst [vmem:[#allocation10] sm:$0xff] %v708_v18 }
 0x319   :  { %808 = shalt.err (!%p805_p8)
}
 0x31a   :  { %s809_s10 = scalar_lea.hbm %s961_s7, 128 }
 0x31b   :  { %p810_p9 = scmp.ne.s32.totalorder %s961_s7, %s809_s10  ;;  %p813_p10 = scmp.lt.u32.totalorder %s809_s10, %s961_s7 }
 0x31d   :  { %p815_p11 = pnand %p813_p10, %p810_p9 }
 0x31f   :  { %818 = shalt.err (!%p815_p11)
}
 0x320   :  { %544 = dma.vmem_to_hbm [thread:$0]  %s542_s30, 128, %s961_s7, [#allocation4]  }
 0x321   :  { %825 = dma.done.wait [#allocation4], 128  }
 0x322   :  { %826 = vsyncadd [#allocation4], 4294967168 }
 0x323   :  { %548 = vsyncpa [#allocation3], 1 }
 0x324   :  { %549 = vsyncpa [#allocation6], 1 }
 0x325   :  { %550 = vsyncpa [#allocation9], 1 }
 0x326   :  { %551 = vsyncpa [#allocation4], 1 }

</bundles_post_ra>
